<compile_context>
chip_gen: v7x
topology: tpu7x:2x2x1
jax: 0.10.0
libtpu: 0.0.40
codegen_flags: <defaults>
</compile_context>

<pallas_src>
import jax
import jax.numpy as jnp
from jax.experimental import pallas as pl
from jax.experimental.pallas import tpu as pltpu

_HIGHEST = jax.lax.Precision.HIGHEST


def _softplus(v):
    # Numerically stable softplus; exp/log1p go to the EUP inside the kernel.
    return jnp.maximum(v, 0.0) + jnp.log1p(jnp.exp(-jnp.abs(v)))


def _round_up(a, b):
    return (a + b - 1) // b * b


def _cdiv(a, b):
    return (a + b - 1) // b


def _expand_matrix(tile_h, r):
    """E[h, h*r + j] = 1 for j in [0, r), else 0.

    Built in-kernel from 2-D iotas (VPU select); avoids materializing a dense
    (H, H*R) matrix in HBM.  No integer division (compare against row*r).
    """
    row = jax.lax.broadcasted_iota(jnp.int32, (tile_h, tile_h * r), 0)
    col = jax.lax.broadcasted_iota(jnp.int32, (tile_h, tile_h * r), 1)
    d = col - row * r
    return jnp.where((d >= 0) & (d < r), jnp.float32(1.0), jnp.float32(0.0))


# ---------------------------------------------------------------------------
# Kernels
# ---------------------------------------------------------------------------
def _rat_writer_ts_kernel(x_ref, td_ref, wu_ref, bu_ref, kflat_ref,
                          out_ref, kcur_ref):
    """Timescale branch: one (row-tile, hidden-tile) block of both outputs."""
    tile_rows, tile_h = x_ref.shape
    r = kcur_ref.shape[-1] // tile_h

    # t = t_up(t_down(raw)) for this hidden tile.  K = rank is tiny, so
    # HIGHEST precision here costs ~nothing and keeps t at f32 accuracy.
    t = jnp.dot(td_ref[...], wu_ref[...],
                preferred_element_type=jnp.float32, precision=_HIGHEST)
    t = t + bu_ref[...]                       # (1, tile_h) broadcast over rows
    t_pos = _softplus(t)                      # (tile_rows, tile_h)

    x = x_ref[...].astype(jnp.float32)

    # Lane expansion via a 0/1 block matrix on the MXU (DEFAULT precision:
    # single bf16 pass -- each output element is exactly one product), then a
    # f32 VPU multiply by softplus(k).
    e = _expand_matrix(tile_h, r)
    t_exp = jnp.dot(t_pos, e, preferred_element_type=jnp.float32)
    xt_exp = jnp.dot(x * t_pos, e, preferred_element_type=jnp.float32)

    k_row = kflat_ref[...]                    # (1, tile_h*R), f32
    kcur_ref[...] = (t_exp * k_row).astype(kcur_ref.dtype)
    out_ref[...] = (xt_exp * k_row).astype(out_ref.dtype)


def _rat_writer_const_kernel(x_ref, kflat_ref, out_ref):
    """timescale_rank is None: out = x.unsqueeze(-1) * softplus(k)."""
    tile_rows, tile_h = x_ref.shape
    r = out_ref.shape[-1] // tile_h
    e = _expand_matrix(tile_h, r)
    x_exp = jnp.dot(x_ref[...].astype(jnp.float32), e,
                    preferred_element_type=jnp.float32)
    out_ref[...] = (x_exp * kflat_ref[...]).astype(out_ref.dtype)


# ---------------------------------------------------------------------------
# Wrapper
# ---------------------------------------------------------------------------
def rat_writer_forward(x, raw, k, t_down_w=None, t_up_w=None, t_up_b=None):
    """Pallas equivalent of RatWriter.forward.

    Args:
      x:        f32[B, S, H]            residual-stream input.
      raw:      f32[B, S, raw_size]     raw input driving the timescales.
      k:        f32[1, 1, H, R]         the `self.k` parameter.
      t_down_w: f32[rank, raw_size]     t_down.weight (None => timescale_rank=None).
      t_up_w:   f32[H, rank]            t_up.weight.
      t_up_b:   f32[H]                  t_up.bias.

    Returns:
      (out, k_curr): out is f32[B, S, H, R]; k_curr is f32[B, S, H, R] for the
      timescale branch, f32[1, 1, H, R] when timescale_rank is None.
    """
    B, S, H = x.shape
    R = k.shape[-1]
    rows = B * S
    dtype = x.dtype

    # --- tiny parameter-derived tensor (O(H*R), plain JAX) ------------------
    # Lane-dense softplus(k) row: k_flat[0, h*R + r] = softplus(k)[h, r].
    k_flat = _softplus(k.reshape(H, R).astype(jnp.float32)).reshape(1, H * R)

    # --- tiling --------------------------------------------------------------
    tile_h = 128 if (H > 128 and H % 128 == 0) else H
    # Row tile: target 1024 rows, capped so (x + both output blocks), double
    # buffered, stay around <=16 MiB; tile_rows is then chosen so padding is
    # at most 7 rows per tile (instead of up to a full tile).
    blk_bytes_per_row = 4 * tile_h * (1 + 2 * R) * 2
    target_rows = max(64, min(1024, (16 << 20) // blk_bytes_per_row))
    n_row_tiles = _cdiv(rows, target_rows)
    tile_rows = _round_up(_cdiv(rows, n_row_tiles), 8)
    rows_pad = tile_rows * n_row_tiles
    n_h_tiles = H // tile_h
    # Row tiles first: the larger "parallel" axis leads, so v7x's two
    # TensorCores get a balanced split.
    grid = (n_row_tiles, n_h_tiles)

    x2d = x.reshape(rows, H)
    if rows_pad != rows:
        x2d = jnp.pad(x2d, ((0, rows_pad - rows), (0, 0)))

    x_spec = pl.BlockSpec((tile_rows, tile_h), lambda i, j: (i, j))
    out_spec = pl.BlockSpec((tile_rows, tile_h * R), lambda i, j: (i, j))
    kflat_spec = pl.BlockSpec((1, tile_h * R), lambda i, j: (0, j))
    compiler_params = pltpu.CompilerParams(
        dimension_semantics=("parallel", "parallel"),
        vmem_limit_bytes=40 << 20)   # raise v5e's 16 MiB default; < v7x 64 MiB/TC

    if t_down_w is None:
        # timescale_rank is None: k_curr is just softplus(k), computed above.
        cost = pl.CostEstimate(
            flops=2 * rows_pad * H * R * tile_h + rows_pad * H * R,
            transcendentals=0,
            bytes_accessed=4 * (x2d.size + k_flat.size + rows_pad * H * R))
        out2d = pl.pallas_call(
            _rat_writer_const_kernel,
            out_shape=jax.ShapeDtypeStruct((rows_pad, H * R), dtype),
            grid=grid,
            in_specs=[x_spec, kflat_spec],
            out_specs=out_spec,
            compiler_params=compiler_params,
            cost_estimate=cost,
        )(x2d, k_flat)
        out = out2d[:rows].reshape(B, S, H, R)
        k_curr = k_flat.reshape(1, 1, H, R).astype(dtype)
        return out, k_curr

    rank, raw_size = t_down_w.shape
    # Hoisted: td = t_down(raw) does not depend on the hidden tile, so compute
    # it once here (rows x rank, tiny) instead of once per hidden tile inside
    # the kernel; raw and Wd no longer enter the per-step DMA set.
    td = jnp.dot(raw.reshape(rows, raw_size).astype(jnp.float32),
                 t_down_w.T.astype(jnp.float32), precision=_HIGHEST)
    if rows_pad != rows:
        td = jnp.pad(td, ((0, rows_pad - rows), (0, 0)))
    wu_t = t_up_w.T.astype(jnp.float32)              # (rank, H)
    bu = t_up_b.reshape(1, H).astype(jnp.float32)    # (1, H)

    td_spec = pl.BlockSpec((tile_rows, rank), lambda i, j: (i, 0))
    wu_spec = pl.BlockSpec((rank, tile_h), lambda i, j: (0, j))
    bu_spec = pl.BlockSpec((1, tile_h), lambda i, j: (0, j))

    flops = (2 * rows_pad * rank * H              # t_up matmul (per hidden tile)
             + 4 * rows_pad * tile_h * H * R      # two expansion matmuls
             + 3 * rows_pad * H * R)              # VPU epilogue multiplies
    bytes_accessed = 4 * (x2d.size + td.size + wu_t.size + bu.size
                          + k_flat.size + 2 * rows_pad * H * R)
    cost = pl.CostEstimate(flops=flops,
                           transcendentals=2 * rows_pad * H,
                           bytes_accessed=bytes_accessed)

    out2d, kcur2d = pl.pallas_call(
        _rat_writer_ts_kernel,
        out_shape=(jax.ShapeDtypeStruct((rows_pad, H * R), dtype),
                   jax.ShapeDtypeStruct((rows_pad, H * R), dtype)),
        grid=grid,
        in_specs=[x_spec, td_spec, wu_spec, bu_spec, kflat_spec],
        out_specs=(out_spec, out_spec),
        compiler_params=compiler_params,
        cost_estimate=cost,
    )(x2d, td, wu_t, bu, k_flat)

    out = out2d[:rows].reshape(B, S, H, R)
    k_curr = kcur2d[:rows].reshape(B, S, H, R)
    return out, k_curr


# ---------------------------------------------------------------------------
# Pure-JAX reference (mirrors the PyTorch module exactly)
# ---------------------------------------------------------------------------
def rat_writer_reference(x, raw, k, t_down_w=None, t_up_w=None, t_up_b=None):
    k_pos = _softplus(k)                                   # (1, 1, H, R)
    if t_down_w is None:
        k_curr = k_pos
    else:
        t = jnp.einsum("bsr,tr->bst", raw, t_down_w, precision=_HIGHEST)
        t = jnp.einsum("bst,ht->bsh", t, t_up_w, precision=_HIGHEST) + t_up_b
        k_curr = _softplus(t)[..., None] * k_pos
    return x[..., None] * k_curr, k_curr


if __name__ == "__main__":
    key = jax.random.PRNGKey(0)
    kx, kraw, kk, kwd, kwu, kb = jax.random.split(key, 6)

    # Small shapes consistent with the module:
    #   batch=2, seq=8, hidden_size=32, residual_channels=4,
    #   raw_size=16, timescale_rank=8.
    B, S, H, R = 2, 8, 32, 4
    raw_size, rank = 16, 8

    x = jax.random.normal(kx, (B, S, H), dtype=jnp.float32)
    raw = jax.random.normal(kraw, (B, S, raw_size), dtype=jnp.float32)
    k = jax.random.normal(kk, (1, 1, H, R), dtype=jnp.float32) / jnp.sqrt(R)
    t_down_w = jax.random.normal(kwd, (rank, raw_size), dtype=jnp.float32) * 0.2
    t_up_w = jax.random.normal(kwu, (H, rank), dtype=jnp.float32) * 0.2
    t_up_b = jax.random.normal(kb, (H,), dtype=jnp.float32) * 0.1 + 0.54

    # Timescale branch (timescale_rank = 8).
    out, k_curr = jax.block_until_ready(
        rat_writer_forward(x, raw, k, t_down_w, t_up_w, t_up_b))
    out_ref, k_curr_ref = rat_writer_reference(x, raw, k, t_down_w, t_up_w, t_up_b)
    assert out.shape == (B, S, H, R) and k_curr.shape == (B, S, H, R)
    assert jnp.allclose(out, out_ref, rtol=5e-3, atol=1e-5)
    assert jnp.allclose(k_curr, k_curr_ref, rtol=5e-3, atol=1e-5)

    # timescale_rank = None branch.
    out2, k_curr2 = jax.block_until_ready(rat_writer_forward(x, raw, k))
    out2_ref, k_curr2_ref = rat_writer_reference(x, raw, k)
    assert out2.shape == (B, S, H, R) and k_curr2.shape == (1, 1, H, R)
    assert jnp.allclose(out2, out2_ref, rtol=5e-3, atol=1e-5)
    assert jnp.allclose(k_curr2, k_curr2_ref, rtol=5e-3, atol=1e-5)

    print("KERNEL_OK")
</pallas_src>

<mosaic_0001>
module attributes {stable_mosaic.version = 11 : i64} {
  func.func @_rat_writer_ts_kernel(%arg0: i32, %arg1: i32, %arg2: memref<16x32xf32, #tpu.memory_space<vmem>>, %arg3: memref<16x8xf32, #tpu.memory_space<vmem>>, %arg4: memref<8x32xf32, #tpu.memory_space<vmem>>, %arg5: memref<1x32xf32, #tpu.memory_space<vmem>>, %arg6: memref<1x128xf32, #tpu.memory_space<vmem>>, %arg7: memref<16x128xf32, #tpu.memory_space<vmem>>, %arg8: memref<16x128xf32, #tpu.memory_space<vmem>>) attributes {dimension_semantics = [#tpu.dimension_semantics<parallel>, #tpu.dimension_semantics<parallel>], iteration_bounds = array<i64: 1, 1>, scalar_prefetch = 0 : i64, scratch_operands = 0 : i64, tpu.core_type = #tpu.core_type<tc>, window_params = [{transform_indices = @transform_0, window_bounds = array<i64: 16, 32>}, {transform_indices = @transform_1, window_bounds = array<i64: 16, 8>}, {transform_indices = @transform_2, window_bounds = array<i64: 8, 32>}, {transform_indices = @transform_3, window_bounds = array<i64: 1, 32>}, {transform_indices = @transform_4, window_bounds = array<i64: 1, 128>}, {transform_indices = @transform_5, window_bounds = array<i64: 16, 128>}, {transform_indices = @transform_6, window_bounds = array<i64: 16, 128>}]} {
    %c0 = arith.constant 0 : index
    %c0_0 = arith.constant 0 : index
    %0 = vector.load %arg3[%c0, %c0_0] : memref<16x8xf32, #tpu.memory_space<vmem>>, vector<16x8xf32>
    %c0_1 = arith.constant 0 : index
    %c0_2 = arith.constant 0 : index
    %1 = vector.load %arg4[%c0_1, %c0_2] : memref<8x32xf32, #tpu.memory_space<vmem>>, vector<8x32xf32>
    %cst = arith.constant dense<0.000000e+00> : vector<16x32xf32>
    %2 = tpu.matmul %0, %1, %cst {dimension_numbers = #tpu.dot_dimension_numbers<[1], [0], [0], [1], [0, 0, 1, 1], [], []>, precision = #tpu.contract_precision<fp32>} : vector<16x8xf32>, vector<8x32xf32>, vector<16x32xf32> -> vector<16x32xf32>
    %c0_3 = arith.constant 0 : index
    %c0_4 = arith.constant 0 : index
    %3 = vector.load %arg5[%c0_3, %c0_4] : memref<1x32xf32, #tpu.memory_space<vmem>>, vector<1x32xf32>
    %4 = vector.broadcast %3 : vector<1x32xf32> to vector<16x32xf32>
    %5 = arith.addf %2, %4 : vector<16x32xf32>
    %cst_5 = arith.constant 0.000000e+00 : f32
    %6 = vector.broadcast %cst_5 : f32 to vector<16x32xf32>
    %7 = arith.maximumf %5, %6 : vector<16x32xf32>
    %8 = math.absf %5 : vector<16x32xf32>
    %cst_6 = arith.constant 0.000000e+00 : f32
    %9 = vector.broadcast %cst_6 : f32 to vector<16x32xf32>
    %10 = arith.subf %9, %8 : vector<16x32xf32>
    %11 = math.exp %10 : vector<16x32xf32>
    %12 = math.log1p %11 : vector<16x32xf32>
    %13 = arith.addf %7, %12 : vector<16x32xf32>
    %c0_7 = arith.constant 0 : index
    %c0_8 = arith.constant 0 : index
    %14 = vector.load %arg2[%c0_7, %c0_8] : memref<16x32xf32, #tpu.memory_space<vmem>>, vector<16x32xf32>
    %15 = tpu.iota {dimensions = array<i32: 0>} : vector<32x128xi32>
    %16 = tpu.iota {dimensions = array<i32: 1>} : vector<32x128xi32>
    %c4_i32 = arith.constant 4 : i32
    %17 = vector.broadcast %c4_i32 : i32 to vector<32x128xi32>
    %18 = arith.muli %15, %17 : vector<32x128xi32>
    %19 = arith.subi %16, %18 : vector<32x128xi32>
    %c0_i32 = arith.constant 0 : i32
    %20 = vector.broadcast %c0_i32 : i32 to vector<32x128xi32>
    %21 = arith.cmpi sge, %19, %20 : vector<32x128xi32>
    %c4_i32_9 = arith.constant 4 : i32
    %22 = vector.broadcast %c4_i32_9 : i32 to vector<32x128xi32>
    %23 = arith.cmpi slt, %19, %22 : vector<32x128xi32>
    %24 = arith.andi %21, %23 : vector<32x128xi1>
    %cst_10 = arith.constant 1.000000e+00 : f32
    %cst_11 = arith.constant 0.000000e+00 : f32
    %25 = vector.broadcast %cst_10 : f32 to vector<32x128xf32>
    %26 = vector.broadcast %cst_11 : f32 to vector<32x128xf32>
    %27 = arith.select %24, %25, %26 : vector<32x128xi1>, vector<32x128xf32>
    %cst_12 = arith.constant dense<0.000000e+00> : vector<16x128xf32>
    %28 = tpu.matmul %13, %27, %cst_12 {dimension_numbers = #tpu.dot_dimension_numbers<[1], [0], [0], [1], [0, 0, 1, 1], [], []>} : vector<16x32xf32>, vector<32x128xf32>, vector<16x128xf32> -> vector<16x128xf32>
    %29 = arith.mulf %14, %13 : vector<16x32xf32>
    %cst_13 = arith.constant dense<0.000000e+00> : vector<16x128xf32>
    %30 = tpu.matmul %29, %27, %cst_13 {dimension_numbers = #tpu.dot_dimension_numbers<[1], [0], [0], [1], [0, 0, 1, 1], [], []>} : vector<16x32xf32>, vector<32x128xf32>, vector<16x128xf32> -> vector<16x128xf32>
    %c0_14 = arith.constant 0 : index
    %c0_15 = arith.constant 0 : index
    %31 = vector.load %arg6[%c0_14, %c0_15] : memref<1x128xf32, #tpu.memory_space<vmem>>, vector<1x128xf32>
    %32 = vector.broadcast %31 : vector<1x128xf32> to vector<16x128xf32>
    %33 = arith.mulf %28, %32 : vector<16x128xf32>
    %c0_16 = arith.constant 0 : index
    %c0_17 = arith.constant 0 : index
    %34 = vector.load %arg8[%c0_16, %c0_17] : memref<16x128xf32, #tpu.memory_space<vmem>>, vector<16x128xf32>
    tpu.vector_store %arg8[%c0_16, %c0_17], %33 {strides = array<i32>} : memref<16x128xf32, #tpu.memory_space<vmem>>, vector<16x128xf32>,
    %35 = vector.broadcast %31 : vector<1x128xf32> to vector<16x128xf32>
    %36 = arith.mulf %30, %35 : vector<16x128xf32>
    %c0_18 = arith.constant 0 : index
    %c0_19 = arith.constant 0 : index
    %37 = vector.load %arg7[%c0_18, %c0_19] : memref<16x128xf32, #tpu.memory_space<vmem>>, vector<16x128xf32>
    tpu.vector_store %arg7[%c0_18, %c0_19], %36 {strides = array<i32>} : memref<16x128xf32, #tpu.memory_space<vmem>>, vector<16x128xf32>,
    return
  }
  func.func @transform_0(%arg0: i32, %arg1: i32) -> (i32, i32) {
    %c0_i32 = arith.constant 0 : i32
    return %arg0, %arg1 : i32, i32
  }
  func.func @transform_1(%arg0: i32, %arg1: i32) -> (i32, i32) {
    %c0_i32 = arith.constant 0 : i32
    %c0_i32_0 = arith.constant 0 : i32
    return %arg0, %c0_i32 : i32, i32
  }
  func.func @transform_2(%arg0: i32, %arg1: i32) -> (i32, i32) {
    %c0_i32 = arith.constant 0 : i32
    %c0_i32_0 = arith.constant 0 : i32
    return %c0_i32, %arg1 : i32, i32
  }
  func.func @transform_3(%arg0: i32, %arg1: i32) -> (i32, i32) {
    %c0_i32 = arith.constant 0 : i32
    %c0_i32_0 = arith.constant 0 : i32
    return %c0_i32, %arg1 : i32, i32
  }
  func.func @transform_4(%arg0: i32, %arg1: i32) -> (i32, i32) {
    %c0_i32 = arith.constant 0 : i32
    %c0_i32_0 = arith.constant 0 : i32
    return %c0_i32, %arg1 : i32, i32
  }
  func.func @transform_5(%arg0: i32, %arg1: i32) -> (i32, i32) {
    %c0_i32 = arith.constant 0 : i32
    return %arg0, %arg1 : i32, i32
  }
  func.func @transform_6(%arg0: i32, %arg1: i32) -> (i32, i32) {
    %c0_i32 = arith.constant 0 : i32
    return %arg0, %arg1 : i32, i32
  }
}

</mosaic_0001>

<bundles_post_ra>
// kernel: tpu_custom_call.1
= control target key start
LH: loop header
LB: loop body
LE: loop exit
PB: predicated region body
PF: predicated region fallthrough
CT: control target
= control target key end

     0   :  { %12 = vsyncpa [#allocation3], 0  ;;  %vm34_vm0 = vcmask 64512   ;;  %s1107_s0 = inlined_call_operand.vmem [shape: f32[16,32], index: 0, kind: input, shape index: {}]   ;;  %s1108_s1 = inlined_call_operand.vmem [shape: f32[16,8], index: 1, kind: input, shape index: {}]   ;;  %s1109_s2 = inlined_call_operand.vmem [shape: f32[8,32], index: 2, kind: input, shape index: {}]   ;;  %s1110_s3 = inlined_call_operand.vmem [shape: f32[1,32], index: 3, kind: input, shape index: {}]   ;;  %s1111_s4 = inlined_call_operand.vmem [shape: f32[1,128], index: 4, kind: input, shape index: {}]   ;;  %s1112_s5 = inlined_call_operand.hbm [shape: f32[16,128], index: 5, kind: output, shape index: {0}]   ;;  %s1113_s6 = inlined_call_operand.hbm [shape: f32[16,128], index: 6, kind: output, shape index: {1}]  }
   0x1   :  { %v26_v0 = vld [vmem:[%s1109_s2] sm:$0xff]  ;;  %v25_v2 = vld [vmem:[%s1108_s1 + $0x8] sm:$0xff] }
   0x2   :  { %v24_v1 = vld [vmem:[%s1108_s1] sm:$0xff]  ;;  %v42_v3 = vand.u32 4294901760, %v26_v0  ;;  %v39_v5 = vsel %vm34_vm0, %v25_v2, 0 }
   0x3   :  { %v36_v4 = vsel %vm34_vm0, %v24_v1, 0 }
   0x4   :  { %13 = vsyncpa [#allocation5], 0  ;;  %v107_v6 = vand.u32 4294901760, %v36_v4  ;;  %v117_v7 = vand.u32 4294901760, %v39_v5  ;;  %v129_v8 = vsub.f32 %v26_v0, %v42_v3  ;;  %849 = vmatprep.subr.mxu1 %v42_v3  ;;  %v562_v20 = vlaneseq  ;;  %v805_v39 = vld [vmem:[%s1110_s3] ss:$0 sm:$0xff] }
   0x5   :  { %850 = vmatpush3.msra.mxu1 %v42_v3  ;;  %v990_v35 = vmov 1.0|1.0   ;;  %s991_s8 = smov [#allocation4]  }
   0x6   :  { %856 = vmatprep.mubr.f32.mxu0 %v107_v6  ;;  %v108_v9 = vsub.f32 %v36_v4, %v107_v6  ;;  %v118_v10 = vsub.f32 %v39_v5, %v117_v7  ;;  %v130_v11 = vand.u32 4294901760, %v129_v8  ;;  %v563_v21 = vshrl.u32 %v562_v20, 7  ;;  %s790_s9 = sshll.u32 %s991_s8, 4  ;;  %s791_s9 = int_to_ptr.vmem [resolvable:$true] %s790_s9 }
   0x7   :  { %v568_v23 = vand.u32 127, %v562_v20  ;;  %p947_p1 = scmp.lt.s32.totalorder %s791_s9, %s791_s9 }
   0x8   :  { %v109_v12 = vand.u32 4294901760, %v108_v9  ;;  %v119_v13 = vand.u32 4294901760, %v118_v10  ;;  %v131_v14 = vsub.f32 %v129_v8, %v130_v11  ;;  %v564_v22 = vadd.s32 8, %v563_v21 }
   0x9   :  { %v569_v24 = vmul.u32 4, %v563_v21  ;;  %v565_v28 = vadd.s32 16, %v563_v21  ;;  %v566_v29 = vadd.s32 24, %v563_v21 }
   0xa   :  { %v110_v15 = vsub.f32 %v108_v9, %v109_v12  ;;  %v120_v16 = vsub.f32 %v118_v10, %v119_v13  ;;  %v132_v17 = vand.u32 4294901760, %v131_v14  ;;  %v570_v25 = vmul.u32 4, %v564_v22  ;;  %v818_v14 = vld [vmem:[%s1111_s4] ss:$0 sm:$0xff] }
   0xb   :  { %v573_v26 = vsub.s32 %v568_v23, %v569_v24  ;;  %v571_v30 = vmul.u32 4, %v565_v28  ;;  %v572_v31 = vmul.u32 4, %v566_v29 }
   0xc   :  { %v111_v18 = vand.u32 4294901760, %v110_v15  ;;  %854 = vmatprep.subr.mxu0 %v132_v17  ;;  %v121_v19 = vand.u32 4294901760, %v120_v16  ;;  %v574_v27 = vsub.s32 %v568_v23, %v570_v25 }
   0xd   :  { %855 = vmatpush3.msra.mxu0 %v132_v17  ;;  %vm577_vm1 = vcmp.ge.s32.totalorder %v573_v26, 0  ;;  %vm581_vm3 = vcmp.lt.s32.totalorder %v573_v26, 4  ;;  %v575_v33 = vsub.s32 %v568_v23, %v571_v30  ;;  %v576_v34 = vsub.s32 %v568_v23, %v572_v31 }
   0xe   :  { %851 = vmatprep.mubr.f32.mxu1 %v111_v18  ;;  %857 = vmatmul.mubr.f32.vlgmr.msra.gmra.mrb[0].mxu0 %v117_v7  ;;  %vm578_vm2 = vcmp.ge.s32.totalorder %v574_v27, 0  ;;  %vm582_vm4 = vcmp.lt.s32.totalorder %v574_v27, 4  ;;  %vm585_vm5 = vmand %vm577_vm1, %vm581_vm3  ;;  %vm593_vm1 = vcmask 261120  }
   0xf   :  { %859 = vmatprep.subr.mxu0 %v129_v8  ;;  %861 = vmatprep.mubr.f32.mxu0 %v108_v9  ;;  %vm586_vm6 = vmand %vm578_vm2, %vm582_vm4  ;;  %vm579_vm8 = vcmp.ge.s32.totalorder %v575_v33, 0  ;;  %vm580_vm9 = vcmp.ge.s32.totalorder %v576_v34, 0  ;;  %vm583_vm10 = vcmp.lt.s32.totalorder %v575_v33, 4  ;;  %vm584_vm11 = vcmp.lt.s32.totalorder %v576_v34, 4 }
  0x10   :  { %860 = vmatpush3.msra.mxu0 %v129_v8  ;;  %852 = vmatmul.mubr.f32.vlgmr.msra.gmra.mrb[0].mxu1 %v121_v19  ;;  %vm1039_vm7 = vmpackc.low %vm586_vm6, %vm585_vm5  ;;  %v560_v8 = vld [vmem:[%s1107_s0] sm:$0xff] }
  0x11   :  { %864 = vmatprep.subr.mxu0 %v42_v3  ;;  %902 = vmatprep.subr.msk.bf16.mxu1 %vm1039_vm7, %v990_v35  ;;  %vm587_vm12 = vmand %vm579_vm8, %vm583_vm10 }
  0x12   :  { %904 = vmatpush3.bf16.msk.msra.mxu1 %vm1039_vm7, %v990_v35  ;;  %vm588_vm13 = vmand %vm580_vm9, %vm584_vm11 }
  0x13   :  { %vm1049_vm14 = vmpackc.low %vm588_vm13, %vm587_vm12 }
  0x14   :  { %906 = vmatprep.subr.msk.bf16.mxu1 %vm1049_vm14, %v990_v35 }
  0x16   :  { %862 = vmatmul.mubr.f32.vlgmr.msra.gmra.mrb[0].mxu0 %v118_v10  ;;  %908 = vmatpush3.bf16.msk.msra.mxu1 %vm1049_vm14, %v990_v35 }
  0x17   :  { %865 = vmatpush3.msra.mxu0 %v42_v3  ;;  %866 = vmatprep.mubr.f32.mxu0 %v109_v12  ;;  %v561_v12 = vld [vmem:[%s1107_s0 + $0x8] sm:$0xff]  ;;  %s942_s0 = scalar_lea.vmem %s791_s9, 256 }
  0x18   :  { %869 = vmatprep.subr.mxu0 %v130_v11  ;;  %910 = vmatprep.subr.msk.bf16.mxu1 %vm1039_vm7, %v990_v35  ;;  %p943_p0 = scmp.ne.s32.totalorder %s791_s9, %s942_s0  ;;  %p948_p2 = scmp.lt.s32.totalorder %s942_s0, %s942_s0 }
  0x1a   :  { %p949_p3 = por %p948_p2, %p947_p1 }
  0x1c   :  { %p950_p4 = pnand %p949_p3, %p943_p0 }
  0x1e   :  { %867 = vmatmul.mubr.f32.vlgmr.msra.gmra.mrb[0].mxu0 %v119_v13 }
  0x1f   :  { %870 = vmatpush3.msra.mxu0 %v130_v11  ;;  %871 = vmatprep.mubr.f32.mxu0 %v107_v6 }
  0x20   :  { %874 = vmatprep.subr.mxu0 %v42_v3 }
  0x26   :  { %872 = vmatmul.mubr.f32.vlgmr.msra.gmra.mrb[0].mxu0 %v117_v7 }
  0x27   :  { %875 = vmatpush3.msra.mxu0 %v42_v3  ;;  %876 = vmatprep.mubr.f32.mxu0 %v107_v6 }
  0x2e   :  { %877 = vmatmul.mubr.f32.vlgmr.msra.gmra.mrb[0].mxu0 %v117_v7 }
  0xe3   :  { %v853_v37 = vpop.f32.mrb[0].mxu1 }
  0xe4   :  { %v113_v38 = vpop.f32.mrb[1].mxu1  ;;  %v124_v40 = vadd.f32 %v853_v37, %v805_v39 }
  0xe5   :  { %v114_v41 = vadd.f32 %v805_v39, %v113_v38 }
 0x101   :  { %v878_v42 = vpop.f32.mrb[0].mxu0 }
 0x102   :  { %v918_v43 = vadd.f32 %v878_v42, %v124_v40  ;;  %v520_v44 = vpop.f32.mrb[1].mxu0 }
 0x103   :  { %v920_v45 = vadd.f32 %v520_v44, %v114_v41 }
 0x104   :  { %v533_v46 = vand.u32 2147483647, %v918_v43  ;;  %v531_v6 = vmax.f32 %v918_v43, 0.0 }
 0x105   :  { %v532_v47 = vand.u32 2147483647, %v920_v45  ;;  %v530_v5 = vmax.f32 %v920_v45, 0.0 }
 0x106   :  { %v535_v48 = vsub.f32 0.0, %v533_v46 }
 0x107   :  { %v534_v49 = vsub.f32 0.0, %v532_v47 }
 0x108   :  { %v538_v50 = vmul.f32 1.442695, %v535_v48 }
 0x109   :  { %v536_v51 = vmul.f32 1.442695, %v534_v49 }
 0x10a   :  { %934 = vpow2.f32 %v538_v50 }
 0x10b   :  { %936 = vpow2.f32 %v536_v51 }
 0x114   :  { %v935_v52 = vpop.eup %934 }
 0x115   :  { %v937_v53 = vpop.eup %936  ;;  %v549_v54 = vadd.f32 1.0, %v935_v52  ;;  %v552_v56 = vmul.f32 -0.5, %v935_v52  ;;  %v555_v59 = vand.u32 2147483647, %v935_v52 }
 0x116   :  { %v540_v55 = vadd.f32 1.0, %v937_v53  ;;  %v543_v57 = vmul.f32 -0.5, %v937_v53  ;;  %v546_v61 = vand.u32 2147483647, %v937_v53 }
 0x117   :  { %938 = vlog2.f32 %v549_v54  ;;  %v553_v58 = vadd.f32 1.0, %v552_v56  ;;  %vm556_vm15 = vcmp.lt.f32.partialorder %v555_v59, 0.0004427343 }
 0x118   :  { %940 = vlog2.f32 %v540_v55  ;;  %v544_v60 = vadd.f32 1.0, %v543_v57  ;;  %vm547_vm0 = vcmp.lt.f32.partialorder %v546_v61, 0.0004427343 }
 0x119   :  { %v554_v1 = vmul.f32 %v935_v52, %v553_v58 }
 0x11a   :  { %v545_v3 = vmul.f32 %v937_v53, %v544_v60 }
 0x121   :  { %v939_v62 = vpop.eup %938 }
 0x122   :  { %v941_v63 = vpop.eup %940  ;;  %v551_v0 = vmul.f32 0.6931472, %v939_v62 }
 0x123   :  { %v542_v2 = vmul.f32 0.6931472, %v941_v63 }
 0x124   :  { %v557_v4 = vsel %vm556_vm15, %v554_v1, %v551_v0 }
 0x125   :  { %v548_v7 = vsel %vm547_vm0, %v545_v3, %v542_v2  ;;  %v559_v10 = vadd.f32 %v557_v4, %v531_v6 }
 0x126   :  { %v558_v9 = vadd.f32 %v548_v7, %v530_v5 }
 0x127   :  { %v676_v13 = vmul.f32 %v561_v12, %v559_v10 }
 0x128   :  { %v675_v11 = vmul.f32 %v560_v8, %v558_v9  ;;  %887 = vmatprep.mubr.msk.f32.mxu1 %vm593_vm1, %v558_v9 }
 0x129   :  { %888 = vmatmul.mubr.msk.f32.vlgmr.msra.gmra.mrb[2].mxu1 %vm593_vm1, %v559_v10 }
 0x12a   :  { %912 = vmatpush3.bf16.msk.msra.mxu1 %vm1039_vm7, %v990_v35  ;;  %898 = vmatprep.mubr.msk.f32.mxu1 %vm593_vm1, %v675_v11 }
 0x12b   :  { %914 = vmatprep.subr.msk.bf16.mxu1 %vm1049_vm14, %v990_v35 }
 0x12e   :  { %916 = vmatpush3.bf16.msk.msra.mxu1 %vm1049_vm14, %v990_v35 }
 0x131   :  { %899 = vmatmul.mubr.msk.f32.vlgmr.msra.gmra.mrb[4].mxu1 %vm593_vm1, %v676_v13 }
 0x1fc   :  { %v889_v15 = vpop.f32.mrb[2].mxu1 }
 0x1fd   :  { %v766_v16 = vmul.f32 %v889_v15, %v818_v14  ;;  %v666_v17 = vpop.f32.mrb[3].mxu1 }
 0x1fe   :  { %v765_v18 = vmul.f32 %v818_v14, %v666_v17 }
 0x1ff   :  { %768 = vst [vmem:[#allocation4 + $0x8] sm:$0xff] %v766_v16 }
 0x200   :  { %767 = vst [vmem:[#allocation4] sm:$0xff] %v765_v18 }
 0x201   :  { %953 = shalt.err (!%p950_p4)
}
 0x202   :  { %s954_s4 = scalar_lea.hbm %s1113_s6, 256 }
 0x203   :  { %p955_p5 = scmp.ne.s32.totalorder %s1113_s6, %s954_s4  ;;  %p958_p6 = scmp.lt.u32.totalorder %s954_s4, %s1113_s6 }
 0x205   :  { %p960_p7 = pnand %p958_p6, %p955_p5 }
 0x207   :  { %963 = shalt.err (!%p960_p7)
}
 0x208   :  { %s992_s16 = smov 128   ;;  %s993_s17 = smov 8   ;;  %v900_v19 = vpop.f32.mrb[4].mxu1 }
 0x209   :  { %796 = dma.vmem_to_hbm [thread:$0]  %s791_s9, 256, %s1113_s6, [#allocation5], %s992_s16, %s992_s16, %s993_s17   ;;  %v770_v20 = vmul.f32 %v900_v19, %v818_v14  ;;  %v749_v21 = vpop.f32.mrb[5].mxu1 }
 0x20a   :  { %s994_s20 = smov [#allocation2]   ;;  %v769_v22 = vmul.f32 %v818_v14, %v749_v21 }
 0x20b   :  { %s778_s21 = sshll.u32 %s994_s20, 4  ;;  %772 = vst [vmem:[#allocation2 + $0x8] sm:$0xff] %v770_v20  ;;  %s779_s21 = int_to_ptr.vmem [resolvable:$true] %s778_s21 }
 0x20c   :  { %771 = vst [vmem:[#allocation2] sm:$0xff] %v769_v22  ;;  %s964_s22 = scalar_lea.vmem %s779_s21, 256  ;;  %p969_p9 = scmp.lt.s32.totalorder %s779_s21, %s779_s21 }
 0x20d   :  { %p965_p8 = scmp.ne.s32.totalorder %s779_s21, %s964_s22  ;;  %p970_p10 = scmp.lt.s32.totalorder %s964_s22, %s964_s22 }
 0x20f   :  { %p971_p11 = por %p970_p10, %p969_p9 }
 0x211   :  { %p972_p12 = pnand %p971_p11, %p965_p8 }
 0x213   :  { %975 = shalt.err (!%p972_p12)
}
 0x214   :  { %s976_s6 = scalar_lea.hbm %s1112_s5, 256 }
 0x215   :  { %p977_p13 = scmp.ne.s32.totalorder %s1112_s5, %s976_s6  ;;  %p980_p0 = scmp.lt.u32.totalorder %s976_s6, %s1112_s5 }
 0x217   :  { %p982_p1 = pnand %p980_p0, %p977_p13 }
 0x219   :  { %985 = shalt.err (!%p982_p1)
}
 0x21a   :  { %784 = dma.vmem_to_hbm [thread:$0]  %s779_s21, 256, %s1112_s5, [#allocation3], %s992_s16, %s992_s16, %s993_s17  }
 0x21b   :  { %986 = dma.done.wait [#allocation3], 256  }
 0x21c   :  { %987 = vsyncadd [#allocation3], 4294967040 }
 0x21d   :  { %988 = dma.done.wait [#allocation5], 256  }
 0x21e   :  { %989 = vsyncadd [#allocation5], 4294967040 }
 0x21f   :  { %803 = vsyncpa [#allocation3], 1 }
 0x220   :  { %804 = vsyncpa [#allocation5], 1 }

</bundles_post_ra>
